<compile_context>
chip_gen: v6e
topology: v6e:2x2x1
jax: 0.10.0
libtpu: 0.0.40
codegen_flags: <defaults>
</compile_context>

<pallas_src>
import jax
import jax.numpy as jnp
from jax.experimental import pallas as pl
from jax.experimental.pallas import tpu as pltpu

LANES = 128
SUBLANES = 8
ROW_GRANULE = 16                 # tile_rows granule (fine for f32 and bf16 tiling)
MAX_TILE_ROWS = 8192             # 8192 x 128 x 4 B = 4 MiB per f32 input tile
SPLIT_MIN_ROWS = 512             # >= this many rows -> >= 2 parallel tiles (v7x dual-TC)
VMEM_LIMIT_BYTES = 40 * 1024 * 1024


def _round_up(x, m):
    return ((x + m - 1) // m) * m


def _make_partial_kernel(tile_rows, n_valid, need_mask):
    """Kernel: write the (8,128) partial sum of (c - s)^2 for one input tile."""

    def kernel(c_ref, s_ref, p_ref):
        d = c_ref[...].astype(jnp.float32) - s_ref[...].astype(jnp.float32)
        if need_mask:
            # The final grid block extends past the array rows; the DMA leaves
            # garbage there (OOB reads are unspecified on TPU), so mask every
            # element index >= the true element count.  n_valid is static, so
            # no scalar prefetch is needed.  VPU slack is huge (mem-bound
            # kernel), so the extra compare/select per element is free.
            row = jax.lax.broadcasted_iota(jnp.int32, (tile_rows, LANES), 0)
            lane = jax.lax.broadcasted_iota(jnp.int32, (tile_rows, LANES), 1)
            idx = (pl.program_id(0) * tile_rows + row) * LANES + lane
            d = jnp.where(idx < n_valid, d, 0.0)
        d2 = d * d
        # VPU-only fold (tile_rows, 128) -> (8, 128): sublane groups of 8 stay
        # contiguous so the reshape is layout-friendly (no XLU reduce here).
        p_ref[0] = jnp.sum(d2.reshape(-1, SUBLANES, LANES), axis=0)

    return kernel


def cosine_similarity_mse_loss(sentence_1, sentence_2, cosines, sim):
    """Matches CosineSimilarityMSELoss.forward: returns MSE(cosines, sim) (mean)."""
    del sentence_1, sentence_2  # unused by the reference forward pass
    assert cosines.shape == sim.shape
    n = int(cosines.size)
    assert n > 0

    c_flat = cosines.reshape(-1)
    s_flat = sim.reshape(-1)

    rows = pl.cdiv(n, LANES)

    if rows >= SPLIT_MIN_ROWS:
        # Large path: stream the original buffers (zero extra HBM traffic when
        # n % 128 == 0).  Split into at least 2 tiles so both v7x TCs run.
        pad_to = _round_up(n, LANES)
        if rows > MAX_TILE_ROWS:
            tile_rows = MAX_TILE_ROWS
        else:
            tile_rows = _round_up(pl.cdiv(rows, 2), ROW_GRANULE)
    else:
        # Small path (< 64K elements): pad to a whole (16,128) granule
        # (negligible copy) and run one exact tile -> no partial blocks.
        pad_to = _round_up(n, ROW_GRANULE * LANES)
        tile_rows = pad_to // LANES

    if pad_to != n:
        pad = pad_to - n
        c_flat = jnp.pad(c_flat, (0, pad))
        s_flat = jnp.pad(s_flat, (0, pad))

    rows = pad_to // LANES
    num_tiles = pl.cdiv(rows, tile_rows)
    # Garbage only enters through a partial final block (grid extends past the
    # array rows); zero-padded elements contribute 0 and need no masking.
    need_mask = (num_tiles * tile_rows) != rows

    c2d = c_flat.reshape(rows, LANES)
    s2d = s_flat.reshape(rows, LANES)

    kernel = _make_partial_kernel(tile_rows, n, need_mask)

    in_bytes = 2 * rows * LANES * c2d.dtype.itemsize
    out_bytes = num_tiles * SUBLANES * LANES * 4

    partials = pl.pallas_call(
        kernel,
        out_shape=jax.ShapeDtypeStruct((num_tiles, SUBLANES, LANES), jnp.float32),
        grid_spec=pltpu.PrefetchScalarGridSpec(
            num_scalar_prefetch=0,
            grid=(num_tiles,),
            in_specs=[
                pl.BlockSpec((tile_rows, LANES), lambda i: (i, 0)),
                pl.BlockSpec((tile_rows, LANES), lambda i: (i, 0)),
            ],
            out_specs=pl.BlockSpec((1, SUBLANES, LANES), lambda i: (i, 0, 0)),
        ),
        compiler_params=pltpu.CompilerParams(
            # Independent grid steps -> parallel (uses both TCs on v7x).
            dimension_semantics=("parallel",),
            vmem_limit_bytes=VMEM_LIMIT_BYTES,
        ),
        cost_estimate=pl.CostEstimate(
            flops=3 * n, transcendentals=0, bytes_accessed=in_bytes + out_bytes
        ),
    )(c2d, s2d)

    # One tiny cross-lane reduction + 1/n scale outside the kernel.
    return jnp.sum(partials) * (1.0 / n)


if __name__ == "__main__":
    key = jax.random.PRNGKey(0)
    k1, k2, k3, k4 = jax.random.split(key, 4)

    batch = 256           # number of sentence pairs
    hidden = 32           # embedding dim (sentence tensors unused by forward)

    sentence_1 = jax.random.normal(k1, (batch, hidden), dtype=jnp.float32)
    sentence_2 = jax.random.normal(k2, (batch, hidden), dtype=jnp.float32)
    cosines = jax.random.uniform(k3, (batch,), dtype=jnp.float32, minval=-1.0, maxval=1.0)
    sim = jax.random.uniform(k4, (batch,), dtype=jnp.float32, minval=-1.0, maxval=1.0)

    loss = jax.block_until_ready(
        cosine_similarity_mse_loss(sentence_1, sentence_2, cosines, sim))
    ref = jnp.mean((cosines - sim) ** 2)
    assert jnp.allclose(loss, ref, rtol=1e-5, atol=1e-6), (loss, ref)

    # Exercise every tiling / masking path.
    test_sizes = (
        100,                                      # tiny unaligned -> small padded single tile
        2048,                                     # small aligned -> zero-copy single tile
        2 * SPLIT_MIN_ROWS * LANES,               # mid-size aligned -> 2 parallel tiles, no mask
        2 * MAX_TILE_ROWS * LANES + 32 * LANES,   # large aligned -> short masked final tile
        MAX_TILE_ROWS * LANES + 77,               # large unaligned -> pad-to-128 + masked tail
    )
    for nb in test_sizes:
        kc, ks = jax.random.split(jax.random.PRNGKey(nb), 2)
        c = jax.random.uniform(kc, (nb,), dtype=jnp.float32, minval=-1.0, maxval=1.0)
        s = jax.random.uniform(ks, (nb,), dtype=jnp.float32, minval=-1.0, maxval=1.0)
        got = jax.block_until_ready(cosine_similarity_mse_loss(None, None, c, s))
        want = jnp.mean((c - s) ** 2)
        assert jnp.allclose(got, want, rtol=1e-5, atol=1e-6), (nb, got, want)

    # bf16 inputs stay bf16 end-to-end (halves HBM traffic); accumulation is f32.
    nb = 4096 * LANES + 300
    kc, ks = jax.random.split(jax.random.PRNGKey(7), 2)
    c = jax.random.uniform(kc, (nb,), dtype=jnp.float32,
                           minval=-1.0, maxval=1.0).astype(jnp.bfloat16)
    s = jax.random.uniform(ks, (nb,), dtype=jnp.float32,
                           minval=-1.0, maxval=1.0).astype(jnp.bfloat16)
    got = jax.block_until_ready(cosine_similarity_mse_loss(None, None, c, s))
    want = jnp.mean((c.astype(jnp.float32) - s.astype(jnp.float32)) ** 2)
    assert jnp.allclose(got, want, rtol=1e-4, atol=1e-5), (got, want)

    print("KERNEL_OK")
</pallas_src>

<mosaic_0001>
module attributes {stable_mosaic.version = 11 : i64} {
  func.func @kernel(%arg0: i32, %arg1: memref<16x128xf32, #tpu.memory_space<vmem>>, %arg2: memref<16x128xf32, #tpu.memory_space<vmem>>, %arg3: memref<1x8x128xf32, #tpu.memory_space<vmem>>) attributes {dimension_semantics = [#tpu.dimension_semantics<parallel>], iteration_bounds = array<i64: 1>, scalar_prefetch = 0 : i64, scratch_operands = 0 : i64, tpu.core_type = #tpu.core_type<tc>, window_params = [{transform_indices = @transform_0, window_bounds = array<i64: 16, 128>}, {transform_indices = @transform_1, window_bounds = array<i64: 16, 128>}, {transform_indices = @transform_2, window_bounds = array<i64: 1, 8, 128>}]} {
    %c0 = arith.constant 0 : index
    %c0_0 = arith.constant 0 : index
    %0 = vector.load %arg1[%c0, %c0_0] : memref<16x128xf32, #tpu.memory_space<vmem>>, vector<16x128xf32>
    %c0_1 = arith.constant 0 : index
    %c0_2 = arith.constant 0 : index
    %1 = vector.load %arg2[%c0_1, %c0_2] : memref<16x128xf32, #tpu.memory_space<vmem>>, vector<16x128xf32>
    %2 = arith.subf %0, %1 : vector<16x128xf32>
    %3 = arith.mulf %2, %2 : vector<16x128xf32>
    %4 = vector.shape_cast %3 : vector<16x128xf32> to vector<2x8x128xf32>
    %cst = arith.constant dense<0.000000e+00> : vector<8x128xf32>
    %5 = vector.multi_reduction <add>, %4, %cst [0] : vector<2x8x128xf32> to vector<8x128xf32>
    %c0_3 = arith.constant 0 : index
    %c0_4 = arith.constant 0 : index
    %c0_5 = arith.constant 0 : index
    %6 = vector.load %arg3[%c0_3, %c0_4, %c0_5] : memref<1x8x128xf32, #tpu.memory_space<vmem>>, vector<1x8x128xf32>
    %7 = vector.shape_cast %6 : vector<1x8x128xf32> to vector<8x128xf32>
    %8 = vector.shape_cast %5 : vector<8x128xf32> to vector<1x8x128xf32>
    tpu.vector_store %arg3[%c0_3, %c0_4, %c0_5], %8 {strides = array<i32>} : memref<1x8x128xf32, #tpu.memory_space<vmem>>, vector<1x8x128xf32>,
    return
  }
  func.func @transform_0(%arg0: i32) -> (i32, i32) {
    %c0_i32 = arith.constant 0 : i32
    %c0_i32_0 = arith.constant 0 : i32
    return %arg0, %c0_i32 : i32, i32
  }
  func.func @transform_1(%arg0: i32) -> (i32, i32) {
    %c0_i32 = arith.constant 0 : i32
    %c0_i32_0 = arith.constant 0 : i32
    return %arg0, %c0_i32 : i32, i32
  }
  func.func @transform_2(%arg0: i32) -> (i32, i32, i32) {
    %c0_i32 = arith.constant 0 : i32
    %c0_i32_0 = arith.constant 0 : i32
    %c0_i32_1 = arith.constant 0 : i32
    return %arg0, %c0_i32, %c0_i32_0 : i32, i32, i32
  }
}

</mosaic_0001>

<bundles_post_ra>
// kernel: tpu_custom_call.1
= control target key start
LH: loop header
LB: loop body
LE: loop exit
PB: predicated region body
PF: predicated region fallthrough
CT: control target
= control target key end

     0   :  { %7 = vsyncpa [#allocation3], 0  ;;  %s166_s0 = inlined_call_operand.hbm [shape: f32[16,128], index: 0, kind: input, shape index: {}]   ;;  %s167_s1 = inlined_call_operand.hbm [shape: f32[16,128], index: 1, kind: input, shape index: {}]   ;;  %s168_s2 = inlined_call_operand.hbm [shape: f32[1,8,128], index: 2, kind: output, shape index: {}]  }
   0x1   :  { %8 = vsyncpa [#allocation6], 0 }
   0x2   :  { %9 = vsyncpa [#allocation4], 0  ;;  %s137_s9 = smov [#allocation2]  }
   0x3   :  { %s15_s10 = sshll.u32 %s137_s9, 4  ;;  %s16_s10 = int_to_ptr.vmem [resolvable:$true] %s15_s10 }
   0x4   :  { %s79_s11 = scalar_lea.vmem %s16_s10, 256  ;;  %p84_p1 = scmp.lt.s32.totalorder %s16_s10, %s16_s10 }
   0x5   :  { %p80_p0 = scmp.ne.s32.totalorder %s16_s10, %s79_s11  ;;  %p85_p2 = scmp.lt.s32.totalorder %s79_s11, %s79_s11 }
   0x7   :  { %p86_p3 = por %p85_p2, %p84_p1 }
   0x9   :  { %p87_p4 = pnand %p86_p3, %p80_p0 }
   0xb   :  { %90 = shalt.err (!%p87_p4)
}
   0xc   :  { %s138_s12 = smov 128   ;;  %s139_s13 = smov 8  }
   0xd   :  { %21 = dma.hbm_to_vmem [thread:$0]  %s166_s0, 256, %s16_s10, [#allocation3], %s138_s12, %s138_s12, %s139_s13  }
   0xe   :  { %s140_s16 = smov [#allocation5]  }
   0xf   :  { %s27_s17 = sshll.u32 %s140_s16, 4  ;;  %s28_s17 = int_to_ptr.vmem [resolvable:$true] %s27_s17 }
  0x10   :  { %s99_s18 = scalar_lea.vmem %s28_s17, 256  ;;  %p104_p6 = scmp.lt.s32.totalorder %s28_s17, %s28_s17 }
  0x11   :  { %p100_p5 = scmp.ne.s32.totalorder %s28_s17, %s99_s18  ;;  %p105_p7 = scmp.lt.s32.totalorder %s99_s18, %s99_s18 }
  0x13   :  { %p106_p8 = por %p105_p7, %p104_p6 }
  0x15   :  { %p107_p9 = pnand %p106_p8, %p100_p5 }
  0x17   :  { %110 = shalt.err (!%p107_p9)
}
  0x18   :  { %33 = dma.hbm_to_vmem [thread:$0]  %s167_s1, 256, %s28_s17, [#allocation6], %s138_s12, %s138_s12, %s139_s13  }
  0x19   :  { %131 = dma.done.wait [#allocation3], 256  }
  0x1a   :  { %132 = vsyncadd [#allocation3], 4294967040 }
  0x1b   :  { %133 = dma.done.wait [#allocation6], 256  }
  0x1c   :  { %134 = vsyncadd [#allocation6], 4294967040  ;;  %v40_v0 = vld [vmem:[#allocation2] sm:$0xff]  ;;  %v41_v1 = vld [vmem:[#allocation2 + $0x8] sm:$0xff]  ;;  %s141_s0 = smov [#allocation7]  }
  0x1d   :  { %v42_v2 = vld [vmem:[#allocation5] sm:$0xff]  ;;  %v43_v3 = vld [vmem:[#allocation5 + $0x8] sm:$0xff]  ;;  %s56_s21 = sshll.u32 %s141_s0, 4  ;;  %s57_s21 = int_to_ptr.vmem [resolvable:$true] %s56_s21 }
  0x1e   :  { %v44_v4 = vsub.f32 %v40_v0, %v42_v2  ;;  %v45_v5 = vsub.f32 %v41_v1, %v43_v3  ;;  %s111_s22 = scalar_lea.vmem %s57_s21, 128  ;;  %p116_p11 = scmp.lt.s32.totalorder %s57_s21, %s57_s21 }
  0x1f   :  { %p112_p10 = scmp.ne.s32.totalorder %s57_s21, %s111_s22  ;;  %p117_p12 = scmp.lt.s32.totalorder %s111_s22, %s111_s22 }
  0x20   :  { %v46_v6 = vmul.f32 %v44_v4, %v44_v4  ;;  %v47_v7 = vmul.f32 %v45_v5, %v45_v5 }
  0x21   :  { %p118_p13 = por %p117_p12, %p116_p11 }
  0x22   :  { %v48_v8 = vadd.f32 %v47_v7, %v46_v6 }
  0x23   :  { %p119_p0 = pnand %p118_p13, %p112_p10 }
  0x24   :  { %49 = vst [vmem:[#allocation7] sm:$0xff] %v48_v8 }
  0x25   :  { %122 = shalt.err (!%p119_p0)
}
  0x26   :  { %59 = dma.vmem_to_hbm [thread:$0]  %s57_s21, 128, %s168_s2, [#allocation4]  }
  0x27   :  { %135 = dma.done.wait [#allocation4], 128  }
  0x28   :  { %136 = vsyncadd [#allocation4], 4294967168 }
  0x29   :  { %63 = vsyncpa [#allocation3], 1 }
  0x2a   :  { %64 = vsyncpa [#allocation6], 1 }
  0x2b   :  { %65 = vsyncpa [#allocation4], 1 }

</bundles_post_ra>
